<compile_context>
chip_gen: v5e
topology: v5e:2x2
jax: 0.10.0
libtpu: 0.0.40
codegen_flags: <defaults>
</compile_context>

<pallas_src>
import functools

import jax
import jax.numpy as jnp
from jax.experimental import pallas as pl
from jax.experimental.pallas import tpu as pltpu


def cheby_kernel(x_ref, adjT_ref, w_ref, b_ref, out_ref, polys_ref, *, K):
    """One (batch, time) slice.

    x_ref    : [c_in, N]        one time slice, channel-major, nodes in lanes
    adjT_ref : [N, N]           adj^T for this batch element
    w_ref    : [c_out, K*c_in]  conv weight, columns ordered (k outer, c inner)
    b_ref    : [c_out, 1]       bias
    out_ref  : [c_out, N]
    polys_ref: [K-1, N, N]      scratch: T_k(adj)^T for k = 1..K-1 (persists over t)
    """
    t = pl.program_id(1)

    # Build Chebyshev polynomials of adj^T once per batch element.
    # T_k(adj)^T == T_k(adj^T); recurrence transposed: P_k = 2*P_{k-1}@adj^T - P_{k-2}.
    @pl.when(t == 0)
    def _():
        a_t = adjT_ref[...]                       # [N, N] = adj^T
        polys_ref[0] = a_t                        # P_1
        if K >= 3:
            n = a_t.shape[0]
            row = jax.lax.broadcasted_iota(jnp.int32, (n, n), 0)
            col = jax.lax.broadcasted_iota(jnp.int32, (n, n), 1)
            p_km2 = (row == col).astype(jnp.float32)   # P_0 = I
            p_km1 = a_t
            for k in range(2, K):
                p_k = (2.0 * jnp.dot(p_km1, a_t,
                                     preferred_element_type=jnp.float32)
                       - p_km2)
                polys_ref[k - 1] = p_k
                p_km2, p_km1 = p_km1, p_k

    x_ct = x_ref[...]                             # [c_in, N]
    # Graph propagation: G_k[c, q] = sum_n x[c, n] * T_k(adj)[q, n]
    parts = [x_ct]                                # k = 0 : T_0 = I
    for k in range(1, K):
        parts.append(jnp.dot(x_ct, polys_ref[k - 1],
                             preferred_element_type=jnp.float32))
    gcat = jnp.concatenate(parts, axis=0)         # [K*c_in, N], rows = (k, c)

    # Fused channel mix (1x1 conv) as a single MXU matmul + bias.
    out_ref[...] = (jnp.dot(w_ref[...], gcat,
                            preferred_element_type=jnp.float32)
                    + b_ref[...]).astype(out_ref.dtype)


def prepare_params(conv_weight, conv_bias, K, c_in):
    """Hoisted (once, not per forward call) weight/bias layout transforms.

    conv_weight: [c_out, K*c_in, 1, 1] or [c_out, K*c_in]  (channel index = c*K + k)
    returns weight with columns reordered to (k outer, c inner) and bias as [c_out, 1].
    """
    c_out = conv_weight.shape[0]
    w2d = conv_weight.reshape(c_out, K * c_in)                    # cols: c*K + k
    w_ko = (w2d.reshape(c_out, c_in, K)
            .transpose(0, 2, 1)
            .reshape(c_out, K * c_in))                            # cols: k*c_in + c
    return {"w_ko": jnp.asarray(w_ko, jnp.float32),
            "bias2d": jnp.asarray(conv_bias, jnp.float32).reshape(c_out, 1)}


def cheby_conv_ds_forward(x, adj, w_ko, bias2d, *, K):
    """x: [B, N, c_in, T], adj: [B, N, N]  ->  [B, c_out, N, T]."""
    B, N, C, T = x.shape
    c_out = w_ko.shape[0]
    # TODO(synk): the PyTorch module's default K=1 is inconsistent with its own
    # conv1 (it always stacks >= 2 Laplacians); we require K >= 2 like real usage.
    assert K >= 2, "cheby_conv_ds requires K >= 2"
    assert w_ko.shape[1] == K * C

    xw = jnp.transpose(x, (0, 3, 2, 1))          # [B, T, c_in, N]  (nodes in lanes)
    adjT = jnp.transpose(adj, (0, 2, 1))         # [B, N, N]  (adj^T)

    out = pl.pallas_call(
        functools.partial(cheby_kernel, K=K),
        out_shape=jax.ShapeDtypeStruct((B, T, c_out, N), jnp.float32),
        grid_spec=pltpu.PrefetchScalarGridSpec(
            num_scalar_prefetch=0,
            grid=(B, T),
            in_specs=[
                pl.BlockSpec((None, None, C, N), lambda b, t: (b, t, 0, 0)),
                pl.BlockSpec((None, N, N), lambda b, t: (b, 0, 0)),
                pl.BlockSpec((c_out, K * C), lambda b, t: (0, 0)),
                pl.BlockSpec((c_out, 1), lambda b, t: (0, 0)),
            ],
            out_specs=pl.BlockSpec((None, None, c_out, N),
                                   lambda b, t: (b, t, 0, 0)),
            scratch_shapes=[pltpu.VMEM((K - 1, N, N), jnp.float32)],
        ),
        compiler_params=pltpu.CompilerParams(
            dimension_semantics=("parallel", "arbitrary")),
    )(xw, adjT, w_ko, bias2d)

    return jnp.transpose(out, (0, 2, 3, 1))      # [B, c_out, N, T]


def cheby_conv_ds_reference(x, adj, conv_weight, conv_bias, K):
    """Pure-JAX mirror of the PyTorch forward (for correctness check)."""
    xp = jnp.transpose(x, (0, 2, 1, 3))          # [B, c_in, N, T]
    B, C, N, T = xp.shape
    L0 = jnp.broadcast_to(jnp.eye(N, dtype=xp.dtype), (B, N, N))
    L1 = adj
    Ls = [L0, L1]
    for _ in range(2, K):
        L2 = 2.0 * jnp.matmul(adj, L1) - L0
        L0, L1 = L1, L2
        Ls.append(L2)
    Lap = jnp.swapaxes(jnp.stack(Ls, axis=1), -1, -2)      # [B, K, N, N]
    y = jnp.einsum('bcnl,bknq->bckql', xp, Lap)            # [B, C, K, N, T]
    y = y.reshape(B, -1, N, T)                             # channels: c*K + k
    w2d = conv_weight.reshape(conv_weight.shape[0], -1)
    return (jnp.einsum('oi,binl->bonl', w2d, y)
            + conv_bias.reshape(1, -1, 1, 1))


if __name__ == "__main__":
    B, N, C, T = 2, 8, 4, 16          # batch, nodes, c_in, temporal length
    K, c_out = 3, 16

    key = jax.random.PRNGKey(0)
    kx, ka, kw, kb = jax.random.split(key, 4)
    x = 0.5 * jax.random.normal(kx, (B, N, C, T), dtype=jnp.float32)
    adj = 0.25 * jax.random.normal(ka, (B, N, N), dtype=jnp.float32)
    conv_weight = 0.2 * jax.random.normal(kw, (c_out, K * C, 1, 1), dtype=jnp.float32)
    conv_bias = 0.1 * jax.random.normal(kb, (c_out,), dtype=jnp.float32)

    prepared = prepare_params(conv_weight, conv_bias, K, C)
    fwd = jax.jit(cheby_conv_ds_forward, static_argnames=("K",))
    out = fwd(x, adj, prepared["w_ko"], prepared["bias2d"], K=K)
    out = jax.block_until_ready(out)

    ref = cheby_conv_ds_reference(x, adj, conv_weight, conv_bias, K)
    assert out.shape == (B, c_out, N, T)
    max_err = float(jnp.max(jnp.abs(out - ref)))
    assert jnp.allclose(out, ref, atol=2e-2, rtol=2e-2), f"mismatch, max err {max_err}"

    print("KERNEL_OK")
</pallas_src>

<mosaic_0001>
module attributes {stable_mosaic.version = 11 : i64} {
  func.func @cheby_kernel(%arg0: i32, %arg1: i32, %arg2: memref<1x1x4x8xf32, #tpu.memory_space<vmem>>, %arg3: memref<1x8x8xf32, #tpu.memory_space<vmem>>, %arg4: memref<16x12xf32, #tpu.memory_space<vmem>>, %arg5: memref<16x1xf32, #tpu.memory_space<vmem>>, %arg6: memref<1x1x16x8xf32, #tpu.memory_space<vmem>>, %arg7: memref<2x8x8xf32, #tpu.memory_space<vmem>>) attributes {dimension_semantics = [#tpu.dimension_semantics<parallel>, #tpu.dimension_semantics<arbitrary>], iteration_bounds = array<i64: 2, 16>, scalar_prefetch = 0 : i64, scratch_operands = 1 : i64, tpu.core_type = #tpu.core_type<tc>, window_params = [{transform_indices = @transform_0, window_bounds = array<i64: 1, 1, 4, 8>}, {transform_indices = @transform_1, window_bounds = array<i64: 1, 8, 8>}, {pipeline_mode = #tpu.pipeline_mode<synchronous>, transform_indices = @transform_2, window_bounds = array<i64: 16, 12>}, {pipeline_mode = #tpu.pipeline_mode<synchronous>, transform_indices = @transform_3, window_bounds = array<i64: 16, 1>}, {transform_indices = @transform_4, window_bounds = array<i64: 1, 1, 16, 8>}]} {
    %c0_i32 = arith.constant 0 : i32
    %0 = arith.cmpi eq, %arg1, %c0_i32 : i32
    %1 = arith.extui %0 : i1 to i32
    %c0_i32_0 = arith.constant 0 : i32
    %2 = arith.cmpi ne, %1, %c0_i32_0 : i32
    scf.if %2 {
      %c0_19 = arith.constant 0 : index
      %c0_20 = arith.constant 0 : index
      %c0_21 = arith.constant 0 : index
      %20 = vector.load %arg3[%c0_19, %c0_20, %c0_21] : memref<1x8x8xf32, #tpu.memory_space<vmem>>, vector<1x8x8xf32>
      %21 = vector.shape_cast %20 : vector<1x8x8xf32> to vector<8x8xf32>
      %c0_22 = arith.constant 0 : index
      %c0_23 = arith.constant 0 : index
      %c0_24 = arith.constant 0 : index
      %22 = vector.load %arg7[%c0_22, %c0_23, %c0_24] : memref<2x8x8xf32, #tpu.memory_space<vmem>>, vector<1x8x8xf32>
      %23 = vector.shape_cast %22 : vector<1x8x8xf32> to vector<8x8xf32>
      %24 = vector.shape_cast %21 : vector<8x8xf32> to vector<1x8x8xf32>
      tpu.vector_store %arg7[%c0_22, %c0_23, %c0_24], %24 {strides = array<i32>} : memref<2x8x8xf32, #tpu.memory_space<vmem>>, vector<1x8x8xf32>,
      %25 = tpu.iota {dimensions = array<i32: 0>} : vector<8x8xi32>
      %26 = tpu.iota {dimensions = array<i32: 1>} : vector<8x8xi32>
      %27 = arith.cmpi eq, %25, %26 : vector<8x8xi32>
      %28 = arith.extui %27 : vector<8x8xi1> to vector<8x8xi32>
      %29 = arith.sitofp %28 : vector<8x8xi32> to vector<8x8xf32>
      %cst_25 = arith.constant dense<0.000000e+00> : vector<8x8xf32>
      %30 = tpu.matmul %21, %21, %cst_25 {dimension_numbers = #tpu.dot_dimension_numbers<[1], [0], [0], [1], [0, 0, 1, 1], [], []>} : vector<8x8xf32>, vector<8x8xf32>, vector<8x8xf32> -> vector<8x8xf32>
      %cst_26 = arith.constant 2.000000e+00 : f32
      %31 = vector.broadcast %cst_26 : f32 to vector<8x8xf32>
      %32 = arith.mulf %31, %30 : vector<8x8xf32>
      %33 = arith.subf %32, %29 : vector<8x8xf32>
      %c1_27 = arith.constant 1 : index
      %c0_28 = arith.constant 0 : index
      %c0_29 = arith.constant 0 : index
      %34 = vector.load %arg7[%c1_27, %c0_28, %c0_29] : memref<2x8x8xf32, #tpu.memory_space<vmem>>, vector<1x8x8xf32>
      %35 = vector.shape_cast %34 : vector<1x8x8xf32> to vector<8x8xf32>
      %36 = vector.shape_cast %33 : vector<8x8xf32> to vector<1x8x8xf32>
      tpu.vector_store %arg7[%c1_27, %c0_28, %c0_29], %36 {strides = array<i32>} : memref<2x8x8xf32, #tpu.memory_space<vmem>>, vector<1x8x8xf32>,
    } else {
    }
    %c0 = arith.constant 0 : index
    %c0_1 = arith.constant 0 : index
    %c0_2 = arith.constant 0 : index
    %c0_3 = arith.constant 0 : index
    %3 = vector.load %arg2[%c0, %c0_1, %c0_2, %c0_3] : memref<1x1x4x8xf32, #tpu.memory_space<vmem>>, vector<1x1x4x8xf32>
    %4 = vector.shape_cast %3 : vector<1x1x4x8xf32> to vector<4x8xf32>
    %c0_4 = arith.constant 0 : index
    %c0_5 = arith.constant 0 : index
    %c0_6 = arith.constant 0 : index
    %5 = vector.load %arg7[%c0_4, %c0_5, %c0_6] : memref<2x8x8xf32, #tpu.memory_space<vmem>>, vector<1x8x8xf32>
    %6 = vector.shape_cast %5 : vector<1x8x8xf32> to vector<8x8xf32>
    %cst = arith.constant dense<0.000000e+00> : vector<4x8xf32>
    %7 = tpu.matmul %4, %6, %cst {dimension_numbers = #tpu.dot_dimension_numbers<[1], [0], [0], [1], [0, 0, 1, 1], [], []>} : vector<4x8xf32>, vector<8x8xf32>, vector<4x8xf32> -> vector<4x8xf32>
    %c1 = arith.constant 1 : index
    %c0_7 = arith.constant 0 : index
    %c0_8 = arith.constant 0 : index
    %8 = vector.load %arg7[%c1, %c0_7, %c0_8] : memref<2x8x8xf32, #tpu.memory_space<vmem>>, vector<1x8x8xf32>
    %9 = vector.shape_cast %8 : vector<1x8x8xf32> to vector<8x8xf32>
    %cst_9 = arith.constant dense<0.000000e+00> : vector<4x8xf32>
    %10 = tpu.matmul %4, %9, %cst_9 {dimension_numbers = #tpu.dot_dimension_numbers<[1], [0], [0], [1], [0, 0, 1, 1], [], []>} : vector<4x8xf32>, vector<8x8xf32>, vector<4x8xf32> -> vector<4x8xf32>
    %11 = tpu.concatenate %4, %7, %10 in 0 : vector<4x8xf32>, vector<4x8xf32>, vector<4x8xf32> -> vector<12x8xf32>
    %c0_10 = arith.constant 0 : index
    %c0_11 = arith.constant 0 : index
    %12 = vector.load %arg4[%c0_10, %c0_11] : memref<16x12xf32, #tpu.memory_space<vmem>>, vector<16x12xf32>
    %cst_12 = arith.constant dense<0.000000e+00> : vector<16x8xf32>
    %13 = tpu.matmul %12, %11, %cst_12 {dimension_numbers = #tpu.dot_dimension_numbers<[1], [0], [0], [1], [0, 0, 1, 1], [], []>} : vector<16x12xf32>, vector<12x8xf32>, vector<16x8xf32> -> vector<16x8xf32>
    %c0_13 = arith.constant 0 : index
    %c0_14 = arith.constant 0 : index
    %14 = vector.load %arg5[%c0_13, %c0_14] : memref<16x1xf32, #tpu.memory_space<vmem>>, vector<16x1xf32>
    %15 = vector.broadcast %14 : vector<16x1xf32> to vector<16x8xf32>
    %16 = arith.addf %13, %15 : vector<16x8xf32>
    %c0_15 = arith.constant 0 : index
    %c0_16 = arith.constant 0 : index
    %c0_17 = arith.constant 0 : index
    %c0_18 = arith.constant 0 : index
    %17 = vector.load %arg6[%c0_15, %c0_16, %c0_17, %c0_18] : memref<1x1x16x8xf32, #tpu.memory_space<vmem>>, vector<1x1x16x8xf32>
    %18 = vector.shape_cast %17 : vector<1x1x16x8xf32> to vector<16x8xf32>
    %19 = vector.shape_cast %16 : vector<16x8xf32> to vector<1x1x16x8xf32>
    tpu.vector_store %arg6[%c0_15, %c0_16, %c0_17, %c0_18], %19 {strides = array<i32>} : memref<1x1x16x8xf32, #tpu.memory_space<vmem>>, vector<1x1x16x8xf32>,
    return
  }
  func.func @transform_0(%arg0: i32, %arg1: i32) -> (i32, i32, i32, i32) {
    %c0_i32 = arith.constant 0 : i32
    %c0_i32_0 = arith.constant 0 : i32
    %c0_i32_1 = arith.constant 0 : i32
    return %arg0, %arg1, %c0_i32, %c0_i32_0 : i32, i32, i32, i32
  }
  func.func @transform_1(%arg0: i32, %arg1: i32) -> (i32, i32, i32) {
    %c0_i32 = arith.constant 0 : i32
    %c0_i32_0 = arith.constant 0 : i32
    %c0_i32_1 = arith.constant 0 : i32
    return %arg0, %c0_i32, %c0_i32_0 : i32, i32, i32
  }
  func.func @transform_2(%arg0: i32, %arg1: i32) -> (i32, i32) {
    %c0_i32 = arith.constant 0 : i32
    %c0_i32_0 = arith.constant 0 : i32
    %c0_i32_1 = arith.constant 0 : i32
    return %c0_i32, %c0_i32_0 : i32, i32
  }
  func.func @transform_3(%arg0: i32, %arg1: i32) -> (i32, i32) {
    %c0_i32 = arith.constant 0 : i32
    %c0_i32_0 = arith.constant 0 : i32
    %c0_i32_1 = arith.constant 0 : i32
    return %c0_i32, %c0_i32_0 : i32, i32
  }
  func.func @transform_4(%arg0: i32, %arg1: i32) -> (i32, i32, i32, i32) {
    %c0_i32 = arith.constant 0 : i32
    %c0_i32_0 = arith.constant 0 : i32
    %c0_i32_1 = arith.constant 0 : i32
    return %arg0, %arg1, %c0_i32, %c0_i32_0 : i32, i32, i32, i32
  }
}

</mosaic_0001>

<bundles_post_ra>
// kernel: cheby_conv_ds_forward.1
= control target key start
LH: loop header
LB: loop body
LE: loop exit
PB: predicated region body
PF: predicated region fallthrough
CT: control target
= control target key end

     0   :  { %s628_s15 = smov 0   ;;  %s630_s16 = smov 0   ;;  %s707_s0 = inlined_call_operand.vmem [shape: f32[2,16,4,8], index: 0, kind: input, shape index: {}]   ;;  %s708_s1 = inlined_call_operand.vmem [shape: f32[2,8,8], index: 1, kind: input, shape index: {}]   ;;  %s709_s2 = inlined_call_operand.vmem [shape: f32[16,12], index: 2, kind: input, shape index: {}]   ;;  %s710_s3 = inlined_call_operand.vmem [shape: f32[16,1], index: 3, kind: input, shape index: {}]   ;;  %s711_s4 = inlined_call_operand.vmem [shape: f32[2,16,16,8], index: 4, kind: output, shape index: {}]  }
   0x1   :  { %s632_s17 = smov 0   ;;  %s634_s18 = smov 0  }
   0x2   :  { %s636_s19 = smov 0  }
   0x3 LB: > { %s23_s20 = sadd.s32 1, %s591_s17  ;;  %s26_s21 = sadd.s32 1, %s595_s18  ;;  %s599_s19 = sphi %s636_s19, %s14_s19   ;;  %s595_s18 = sphi %s634_s18, %s715_s18   ;;  %s591_s17 = sphi %s632_s17, %s714_s17   ;;  %s587_s16 = sphi %s630_s16, %s713_s16   ;;  %s583_s15 = sphi %s628_s15, %s712_s15  }
   0x4   : > { %p24_p0 = scmp.ge.s32.totalorder %s23_s20, 16  ;;  %p499_p1 = scmp.ge.s32.totalorder %s599_s19, 1 }
   0x5   : > { %p190_p2 = scmp.lt.s32.totalorder %s599_s19, 33 }
   0x6   : > { %s717_s20 = smov (%p24_p0, %s23_s20), 0  ;;  %s719_s21 = smov (!%p24_p0, %s26_s21), %s595_s18 }
   0x7   : > { %p191_p3 = pnand %p499_p1, %p190_p2  ;;  %p28_p4 = scmp.ge.s32.totalorder %s719_s21, 2 }
   0x8   : > { %p227_p5 = scmp.lt.s32.totalorder (!%p191_p3), %s587_s16, 1  ;;  %p229_p6 = scmp.lt.s32.totalorder (!%p191_p3), %s583_s15, 15 }
   0x9   : > { %s721_s21 = smov (%p28_p4, %s719_s21), 0  ;;  %194 = sbr.rel (%p191_p3) target bundleno = 431 (0x1af), region = 36 }
   0xa   : > { %p506_p7 = scmp.ne.s32.totalorder (!%p191_p3), %s583_s15, 0 }
   0xe   : > { %s723_s16 = smov (!%p227_p5, %s587_s16), 1 }
   0xf   : > { %s230_s22 = scalar_select %p229_p6, %s583_s15, 15 }
  0x10   : > { %s500_s23 = sshll.u32 %s723_s16, 4  ;;  %s502_s24 = sshll.u32 %s723_s16, 3 }
  0x11   : > { %s232_s25 = sadd.s32 %s500_s23, %s230_s22  ;;  %s238_s28 = scalar_lea.vmem %s708_s1, %s502_s24 }
  0x12   : > { %s501_s29 = sshll.u32 %s232_s25, 2  ;;  %s503_s30 = sshll.u32 %s230_s22, 1 }
  0x13   : > { %s234_s7 = scalar_lea.vmem %s707_s0, %s501_s29  ;;  %s504_s8 = sshll.u32 %s723_s16, 5 }
  0x14   : > { %s245_s9 = sadd.s32 %s504_s8, %s503_s30  ;;  %251 = sbr.rel (%p506_p7) target bundleno = 158 (0x9e), region = 40 }
  0x15   : > { %s505_s10 = sshll.u32 %s245_s9, 3 }
  0x16   : > { %s671_s13 = scalar_lea.vmem %s711_s4, %s505_s10 }
  0x19   : > { %v252_v0 = vld [vmem:[%s238_s28] sm:$0xff]  ;;  %vm253_vm0 = vcmask 64512   ;;  %v255_v1 = vlaneseq  ;;  %v601_v4 = vmov 0.0  }
  0x1a   : > { %280 = vmatpush.msra.mxu0 %v252_v0  ;;  %254 = vst.msk [vmem:[#allocation2] sm:$0xff] %vm253_vm0, %v252_v0 }
  0x1b   : > { %508 = vmatmul.msk.f32.vlgmr.msra.gmra.mxu0 %vm253_vm0, %v252_v0  ;;  %v256_v2 = vshrl.u32 %v255_v1, 7  ;;  %v258_v3 = vand.u32 127, %v255_v1 }
  0x1d   : > { %vm259_vm1 = vcmp.eq.s32.totalorder %v256_v2, %v258_v3 }
  0x1e   : > { %v507_v5 = vsel %vm259_vm1, 1.0, %v601_v4 }
  0x98   : > { %v282_v6 = vpop.f32.mrf.mxu0 }
  0x99   : > { %v285_v7 = vmul.f32 2.0, %v282_v6 }
  0x9b   : > { %v286_v8 = vsub.f32 %v285_v7, %v507_v5 }
  0x9d   : > { %288 = vst.msk [vmem:[#allocation2 + $0x8] sm:$0xff] %vm253_vm0, %v286_v8 }
  0x9e PF: > { %v290_v9 = vld [vmem:[#allocation2] sm:$0xff]  ;;  %vm291_vm2 = vcmask 64512   ;;  %v602_v12 = vmov 0   ;;  %v345_v14 = vld [vmem:[%s710_s3 + $0x8] sm:$0xff]  ;;  %vm340_vm3 = vcmask 1043456   ;;  %vm356_vm4 = vcmask 97280  }
  0x9f   : > { %v289_v10 = vld [vmem:[%s234_s7] sm:$0xf]  ;;  %310 = vmatpush.msra.mxu0 %v290_v9  ;;  %560 = vset.pattern.permute.xlu0 %v602_v12  ;;  %v343_v19 = vld [vmem:[%s709_s2 + $0x8] sm:$0xff] }
  0xa0   : > { %509 = vmatmul.msk.f32.vlgmr.msra.gmra.mxu0 %vm291_vm2, %v289_v10  ;;  %v344_v13 = vld [vmem:[%s710_s3] sm:$0xff] }
  0xa1   : > { %348 = vperm.xlu0 %560, %v344_v13   ;;  %v342_v18 = vld [vmem:[%s709_s2] sm:$0xff] }
  0xa4   : > { %v316_v11 = vld [vmem:[#allocation2 + $0x8] sm:$0xff] }
  0xa5   : > { %332 = vmatpush.msra.mxu1 %v316_v11 }
  0xa6   : > { %510 = vmatmul.msk.f32.vlgmr.msra.gmra.mxu1 %vm291_vm2, %v289_v10 }
  0xa9   : > { %353 = vperm.xlu0 %560, %v345_v14  }
 0x113   : > { %v349_v21 = vpop.permute.xlu0 %348 }
 0x11b   : > { %v354_v22 = vpop.permute.xlu0 %353 }
 0x11d   : > { %v312_v15 = vpop.f32.mrf.mxu0 }
 0x11e   : > { %v338_v17 = vrot.slane %v312_v15, 4 }
 0x120   : > { %v341_v20 = vsel %vm340_vm3, %v289_v10, %v338_v17 }
 0x123   : > { %v334_v16 = vpop.f32.mrf.mxu1 }
 0x124   : > { %511 = vmatpush.msk.msra.mxu2 %vm340_vm3, %v334_v16  ;;  %516 = vmatpush.msk.msra.mxu3 %vm340_vm3, %v334_v16 }
 0x126   : > { %381 = vmatpush.msra.mxu2 %v341_v20  ;;  %517 = vmatpush.msra.mxu3 %v341_v20 }
 0x127   : > { %512 = vmatmul.msk.f32.vlgmr.msra.gmra.mxu2 %vm356_vm4, %v342_v18  ;;  %513 = vmatmul.msk.f32.vlgmr.msra.gmra.mxu3 %vm356_vm4, %v343_v19 }
 0x1aa   : > { %v383_v23 = vpop.f32.mrf.mxu2  ;;  %v386_v24 = vpop.f32.mrf.mxu3 }
 0x1ab   : > { %v384_v25 = vadd.f32 %v383_v23, %v349_v21  ;;  %v387_v26 = vadd.f32 %v386_v24, %v354_v22 }
 0x1ad   : > { %389 = vst.msk [vmem:[%s671_s13] sm:$0xff] %vm291_vm2, %v384_v25 }
 0x1ae   : > { %390 = vst.msk [vmem:[%s671_s13 + $0x8] sm:$0xff] %vm291_vm2, %v387_v26 }
 0x1af PF: > { %s14_s19 = sadd.s32 1, %s599_s19   ;;  %s712_s15 = smov %s591_s17 }
 0x1b0   : > { %p11_p8 = scmp.ge.s32.totalorder %s14_s19, 34   ;;  %s713_s16 = smov %s595_s18 }
 0x1b1   : > { %s714_s17 = smov %s717_s20  ;;  %s715_s18 = smov %s721_s21 }
 0x1b2   :  { %13 = sbr.rel (!%p11_p8) target bundleno = 3 (0x3), region = 75 }

</bundles_post_ra>
